<compile_context>
chip_gen: v7x
topology: tpu7x:2x2x1
jax: 0.10.0
libtpu: 0.0.40
codegen_flags: <defaults>
</compile_context>

<pallas_src>
import functools

import jax
import jax.numpy as jnp
import numpy as np
from jax import lax
from jax.experimental import pallas as pl
from jax.experimental.pallas import tpu as pltpu


def _build_toeplitz(w, W, C_in, C_out):
    """Fold the 4x4 ConvTranspose2d kernel (stride=2, pad=1) and the W-direction
    convolution into a single weight slab T of shape (3*W*C_in, 2*W*2*C_out).

    K (contraction) order: (row-tap t in {-1,0,+1}, iw, ci)  -- matches the stacked LHS.
    Lane order:            (ph, wo, pw, co) so a (B*H, L) result is a free reshape to
                           (B, 2H, 2W, C_out).
    Transposed-conv index relation (oh = 2a+ph, ow = 2wo+pw, ih = a+t, wo = iw+s):
        kh = oh - 2*ih + 1 = ph - 2t + 1
        kw = ow - 2*iw + 1 = 2s + pw + 1
    w: (C_in, C_out, 4, 4) PyTorch ConvTranspose2d weight layout.
    """
    sel = np.zeros((3, W, 2, W, 2, 4, 4), np.float32)
    for ti, t in enumerate((-1, 0, 1)):            # input row tap: ih = a + t
        for ph in range(2):                        # output row parity
            kh = ph - 2 * t + 1
            if not 0 <= kh < 4:
                continue
            for s in (-1, 0, 1):                   # output half-col offset: wo = iw + s
                for pw in range(2):                # output col parity
                    kw = 2 * s + pw + 1
                    if not 0 <= kw < 4:
                        continue
                    for iw in range(W):
                        wo = iw + s
                        if 0 <= wo < W:
                            sel[ti, iw, ph, wo, pw, kh, kw] = 1.0
    # (t, iw, ci, ph, wo, pw, co); each entry is exactly one w element or zero.
    T = jnp.einsum('aipoqhk,cdhk->aicpoqd', jnp.asarray(sel), w,
                   precision=lax.Precision.HIGHEST)
    return T.reshape(3 * W * C_in, 2 * W * 2 * C_out)


def _fused_deconv_bn_relu_kernel(xs_ref, t_ref, sel_ref, selt_ref, gamma_ref,
                                 beta_ref, o_ref, *, inv_n, eps):
    # One MXU dot: (B*H, 3*W*C_in) x (3*W*C_in, L) -> (B*H, L), f32 accumulation.
    acc = jnp.dot(xs_ref[...], t_ref[...], preferred_element_type=jnp.float32)

    # Train-mode BatchNorm batch statistics, fully in-kernel (biased variance).
    rsum = jnp.sum(acc, axis=0, keepdims=True)               # (1, L)  per-lane sums
    rsumsq = jnp.sum(acc * acc, axis=0, keepdims=True)       # (1, L)
    # Fold lanes -> channels (channel = lane % C_out) with a one-hot dot.
    ch_sum = jnp.dot(rsum, sel_ref[...], preferred_element_type=jnp.float32)     # (1, C)
    ch_sumsq = jnp.dot(rsumsq, sel_ref[...], preferred_element_type=jnp.float32)  # (1, C)
    mean = ch_sum * inv_n
    # NOTE: E[x^2] - mean^2 in f32; fine at these scales (zero-mean activations).
    var = jnp.maximum(ch_sumsq * inv_n - mean * mean, 0.0)
    scale_c = gamma_ref[...] * lax.rsqrt(var + eps)           # (1, C)
    shift_c = beta_ref[...] - mean * scale_c                  # (1, C)
    # Broadcast per-channel affine back to the per-lane period-C_out pattern.
    scale_l = jnp.dot(scale_c, selt_ref[...], preferred_element_type=jnp.float32)  # (1, L)
    shift_l = jnp.dot(shift_c, selt_ref[...], preferred_element_type=jnp.float32)  # (1, L)

    # Fused BN + ReLU, single lane-dense (B*H, L) store.
    o_ref[...] = jnp.maximum(acc * scale_l + shift_l, 0.0)


def conv_upsample_forward(x_nchw, w_torch, gamma, beta, *, eps=1e-5,
                          compute_dtype=jnp.float32):
    """x_nchw: (B, C_in, H, W) f32.  w_torch: (C_in, C_out, 4, 4) (PyTorch
    ConvTranspose2d weight layout).  Returns (B, C_out, 2H, 2W) f32."""
    B, C_in, H, W = x_nchw.shape
    C_out = w_torch.shape[1]
    OH, OW = 2 * H, 2 * W
    WC = W * C_in
    K = 3 * WC                      # (tap, iw, ci)
    L = 2 * W * 2 * C_out           # (ph, wo, pw, co)

    # Input-sized layout plumbing only (a few KiB): NCHW -> NHWC -> (B, H, W*C_in),
    # then stack the three shifted row windows (ih = a-1, a, a+1, zero-padded) along K.
    x2d = jnp.transpose(x_nchw, (0, 2, 3, 1)).astype(jnp.float32).reshape(B, H, WC)
    zrow = jnp.zeros((B, 1, WC), jnp.float32)
    xs = jnp.concatenate(
        [jnp.concatenate([zrow, x2d[:, :-1]], axis=1),    # tap -1: x[a-1]
         x2d,                                             # tap  0: x[a]
         jnp.concatenate([x2d[:, 1:], zrow], axis=1)],    # tap +1: x[a+1]
        axis=2).reshape(B * H, K).astype(compute_dtype)

    T = _build_toeplitz(w_torch.astype(jnp.float32), W, C_in, C_out).astype(compute_dtype)

    # One-hot channel fold (L, C_out) and broadcast (C_out, L) matrices (f32, exact).
    lane = np.arange(L)
    sel_np = (lane[:, None] % C_out == np.arange(C_out)[None, :]).astype(np.float32)
    sel = jnp.asarray(sel_np)
    selT = jnp.asarray(sel_np.T)

    gamma2 = gamma.reshape(1, C_out).astype(jnp.float32)
    beta2 = beta.reshape(1, C_out).astype(jnp.float32)

    inv_n = 1.0 / float(B * OH * OW)
    kernel = functools.partial(_fused_deconv_bn_relu_kernel, inv_n=inv_n, eps=float(eps))

    out2d = pl.pallas_call(
        kernel,
        out_shape=jax.ShapeDtypeStruct((B * H, L), jnp.float32),
        grid=(1,),
        in_specs=[pl.BlockSpec((B * H, K), lambda i: (0, 0)),     # stacked LHS
                  pl.BlockSpec((K, L), lambda i: (0, 0)),          # Toeplitz slab
                  pl.BlockSpec((L, C_out), lambda i: (0, 0)),      # lane->channel fold
                  pl.BlockSpec((C_out, L), lambda i: (0, 0)),      # channel->lane bcast
                  pl.BlockSpec((1, C_out), lambda i: (0, 0)),      # gamma
                  pl.BlockSpec((1, C_out), lambda i: (0, 0))],     # beta
        out_specs=pl.BlockSpec((B * H, L), lambda i: (0, 0)),
        compiler_params=pltpu.CompilerParams(dimension_semantics=("arbitrary",)),
    )(xs, T, sel, selT, gamma2, beta2)

    # (B*H, L) is row-major identical to (B, 2H, 2W, C_out): free reshape.
    out_nhwc = out2d.reshape(B, OH, OW, C_out)
    # Final NCHW transpose only to match the PyTorch interface (tiny, interface-only).
    return jnp.transpose(out_nhwc, (0, 3, 1, 2))


def _reference(x_nchw, w_torch, gamma, beta, eps=1e-5):
    """Pure-JAX reference: ConvTranspose2d == lhs-dilated conv with flipped kernel,
    then train-mode BatchNorm (batch stats, biased var) and ReLU."""
    Kk = w_torch.shape[2]
    rhs = jnp.transpose(w_torch[:, :, ::-1, ::-1], (2, 3, 0, 1))   # HWIO
    x = jnp.transpose(x_nchw, (0, 2, 3, 1))
    y = lax.conv_general_dilated(
        x, rhs, window_strides=(1, 1),
        padding=((Kk - 2, Kk - 2), (Kk - 2, Kk - 2)),
        lhs_dilation=(2, 2),
        dimension_numbers=("NHWC", "HWIO", "NHWC"),
        precision=lax.Precision.HIGHEST)
    mean = y.mean(axis=(0, 1, 2))
    var = y.var(axis=(0, 1, 2))
    yn = (y - mean) / jnp.sqrt(var + eps) * gamma + beta
    out = jnp.maximum(yn, 0.0)
    return jnp.transpose(out, (0, 3, 1, 2))


if __name__ == "__main__":
    key = jax.random.PRNGKey(0)
    k1, k2 = jax.random.split(key)

    B, C_in, C_out, H, W = 2, 4, 8, 16, 16
    x = jax.random.normal(k1, (B, C_in, H, W), jnp.float32)
    # nn.ConvTranspose2d weight layout: (c_in, c_out, kH, kW); deterministic init.
    w = jax.random.normal(k2, (C_in, C_out, 4, 4), jnp.float32) * 0.1
    gamma = jnp.ones((C_out,), jnp.float32)   # BatchNorm2d default weight
    beta = jnp.zeros((C_out,), jnp.float32)   # BatchNorm2d default bias

    ref = _reference(x, w, gamma, beta)

    # f32 validation path: strict check against the reference.
    fwd = jax.jit(functools.partial(conv_upsample_forward, compute_dtype=jnp.float32))
    out = jax.block_until_ready(fwd(x, w, gamma, beta))
    assert out.shape == (B, C_out, 2 * H, 2 * W)
    np.testing.assert_allclose(np.asarray(out), np.asarray(ref), rtol=1e-4, atol=1e-4)

    # Production bf16-MXU-operand path (f32 accumulation / f32 BN stats): sanity bound.
    fwd_bf16 = jax.jit(functools.partial(conv_upsample_forward,
                                         compute_dtype=jnp.bfloat16))
    out_bf16 = jax.block_until_ready(fwd_bf16(x, w, gamma, beta))
    assert float(jnp.max(jnp.abs(out_bf16 - ref))) < 0.25

    print("KERNEL_OK")
</pallas_src>

<mosaic_0001>
module attributes {stable_mosaic.version = 11 : i64} {
  func.func @_fused_deconv_bn_relu_kernel(%arg0: i32, %arg1: memref<32x192xf32, #tpu.memory_space<vmem>>, %arg2: memref<192x512xf32, #tpu.memory_space<vmem>>, %arg3: memref<512x8xf32, #tpu.memory_space<vmem>>, %arg4: memref<8x512xf32, #tpu.memory_space<vmem>>, %arg5: memref<1x8xf32, #tpu.memory_space<vmem>>, %arg6: memref<1x8xf32, #tpu.memory_space<vmem>>, %arg7: memref<32x512xf32, #tpu.memory_space<vmem>>) attributes {dimension_semantics = [#tpu.dimension_semantics<arbitrary>], iteration_bounds = array<i64: 1>, scalar_prefetch = 0 : i64, scratch_operands = 0 : i64, tpu.core_type = #tpu.core_type<tc>, window_params = [{pipeline_mode = #tpu.pipeline_mode<synchronous>, transform_indices = @transform_0, window_bounds = array<i64: 32, 192>}, {pipeline_mode = #tpu.pipeline_mode<synchronous>, transform_indices = @transform_1, window_bounds = array<i64: 192, 512>}, {pipeline_mode = #tpu.pipeline_mode<synchronous>, transform_indices = @transform_2, window_bounds = array<i64: 512, 8>}, {pipeline_mode = #tpu.pipeline_mode<synchronous>, transform_indices = @transform_3, window_bounds = array<i64: 8, 512>}, {pipeline_mode = #tpu.pipeline_mode<synchronous>, transform_indices = @transform_4, window_bounds = array<i64: 1, 8>}, {pipeline_mode = #tpu.pipeline_mode<synchronous>, transform_indices = @transform_5, window_bounds = array<i64: 1, 8>}, {pipeline_mode = #tpu.pipeline_mode<synchronous>, transform_indices = @transform_6, window_bounds = array<i64: 32, 512>}]} {
    %c0 = arith.constant 0 : index
    %c0_0 = arith.constant 0 : index
    %0 = vector.load %arg1[%c0, %c0_0] : memref<32x192xf32, #tpu.memory_space<vmem>>, vector<32x192xf32>
    %c0_1 = arith.constant 0 : index
    %c0_2 = arith.constant 0 : index
    %1 = vector.load %arg2[%c0_1, %c0_2] : memref<192x512xf32, #tpu.memory_space<vmem>>, vector<192x512xf32>
    %cst = arith.constant dense<0.000000e+00> : vector<32x512xf32>
    %2 = tpu.matmul %0, %1, %cst {dimension_numbers = #tpu.dot_dimension_numbers<[1], [0], [0], [1], [0, 0, 1, 1], [], []>} : vector<32x192xf32>, vector<192x512xf32>, vector<32x512xf32> -> vector<32x512xf32>
    %cst_3 = arith.constant dense<0.000000e+00> : vector<512xf32>
    %3 = vector.multi_reduction <add>, %2, %cst_3 [0] : vector<32x512xf32> to vector<512xf32>
    %4 = vector.shape_cast %3 : vector<512xf32> to vector<1x512xf32>
    %5 = arith.mulf %2, %2 : vector<32x512xf32>
    %cst_4 = arith.constant dense<0.000000e+00> : vector<512xf32>
    %6 = vector.multi_reduction <add>, %5, %cst_4 [0] : vector<32x512xf32> to vector<512xf32>
    %7 = vector.shape_cast %6 : vector<512xf32> to vector<1x512xf32>
    %c0_5 = arith.constant 0 : index
    %c0_6 = arith.constant 0 : index
    %8 = vector.load %arg3[%c0_5, %c0_6] : memref<512x8xf32, #tpu.memory_space<vmem>>, vector<512x8xf32>
    %cst_7 = arith.constant dense<0.000000e+00> : vector<1x8xf32>
    %9 = tpu.matmul %4, %8, %cst_7 {dimension_numbers = #tpu.dot_dimension_numbers<[1], [0], [0], [1], [0, 0, 1, 1], [], []>} : vector<1x512xf32>, vector<512x8xf32>, vector<1x8xf32> -> vector<1x8xf32>
    %c0_8 = arith.constant 0 : index
    %c0_9 = arith.constant 0 : index
    %10 = vector.load %arg3[%c0_8, %c0_9] : memref<512x8xf32, #tpu.memory_space<vmem>>, vector<512x8xf32>
    %cst_10 = arith.constant dense<0.000000e+00> : vector<1x8xf32>
    %11 = tpu.matmul %7, %10, %cst_10 {dimension_numbers = #tpu.dot_dimension_numbers<[1], [0], [0], [1], [0, 0, 1, 1], [], []>} : vector<1x512xf32>, vector<512x8xf32>, vector<1x8xf32> -> vector<1x8xf32>
    %cst_11 = arith.constant 4.8828125E-4 : f32
    %12 = vector.broadcast %cst_11 : f32 to vector<1x8xf32>
    %13 = arith.mulf %9, %12 : vector<1x8xf32>
    %cst_12 = arith.constant 4.8828125E-4 : f32
    %14 = vector.broadcast %cst_12 : f32 to vector<1x8xf32>
    %15 = arith.mulf %11, %14 : vector<1x8xf32>
    %16 = arith.mulf %13, %13 : vector<1x8xf32>
    %17 = arith.subf %15, %16 : vector<1x8xf32>
    %cst_13 = arith.constant 0.000000e+00 : f32
    %18 = vector.broadcast %cst_13 : f32 to vector<1x8xf32>
    %19 = arith.maximumf %17, %18 : vector<1x8xf32>
    %c0_14 = arith.constant 0 : index
    %c0_15 = arith.constant 0 : index
    %20 = vector.load %arg5[%c0_14, %c0_15] : memref<1x8xf32, #tpu.memory_space<vmem>>, vector<1x8xf32>
    %cst_16 = arith.constant 9.99999974E-6 : f32
    %21 = vector.broadcast %cst_16 : f32 to vector<1x8xf32>
    %22 = arith.addf %19, %21 : vector<1x8xf32>
    %23 = math.rsqrt %22 : vector<1x8xf32>
    %24 = arith.mulf %20, %23 : vector<1x8xf32>
    %c0_17 = arith.constant 0 : index
    %c0_18 = arith.constant 0 : index
    %25 = vector.load %arg6[%c0_17, %c0_18] : memref<1x8xf32, #tpu.memory_space<vmem>>, vector<1x8xf32>
    %26 = arith.mulf %13, %24 : vector<1x8xf32>
    %27 = arith.subf %25, %26 : vector<1x8xf32>
    %c0_19 = arith.constant 0 : index
    %c0_20 = arith.constant 0 : index
    %28 = vector.load %arg4[%c0_19, %c0_20] : memref<8x512xf32, #tpu.memory_space<vmem>>, vector<8x512xf32>
    %cst_21 = arith.constant dense<0.000000e+00> : vector<1x512xf32>
    %29 = tpu.matmul %24, %28, %cst_21 {dimension_numbers = #tpu.dot_dimension_numbers<[1], [0], [0], [1], [0, 0, 1, 1], [], []>} : vector<1x8xf32>, vector<8x512xf32>, vector<1x512xf32> -> vector<1x512xf32>
    %c0_22 = arith.constant 0 : index
    %c0_23 = arith.constant 0 : index
    %30 = vector.load %arg4[%c0_22, %c0_23] : memref<8x512xf32, #tpu.memory_space<vmem>>, vector<8x512xf32>
    %cst_24 = arith.constant dense<0.000000e+00> : vector<1x512xf32>
    %31 = tpu.matmul %27, %30, %cst_24 {dimension_numbers = #tpu.dot_dimension_numbers<[1], [0], [0], [1], [0, 0, 1, 1], [], []>} : vector<1x8xf32>, vector<8x512xf32>, vector<1x512xf32> -> vector<1x512xf32>
    %32 = vector.broadcast %29 : vector<1x512xf32> to vector<32x512xf32>
    %33 = arith.mulf %2, %32 : vector<32x512xf32>
    %34 = vector.broadcast %31 : vector<1x512xf32> to vector<32x512xf32>
    %35 = arith.addf %33, %34 : vector<32x512xf32>
    %cst_25 = arith.constant 0.000000e+00 : f32
    %36 = vector.broadcast %cst_25 : f32 to vector<32x512xf32>
    %37 = arith.maximumf %35, %36 : vector<32x512xf32>
    %c0_26 = arith.constant 0 : index
    %c0_27 = arith.constant 0 : index
    %38 = vector.load %arg7[%c0_26, %c0_27] : memref<32x512xf32, #tpu.memory_space<vmem>>, vector<32x512xf32>
    tpu.vector_store %arg7[%c0_26, %c0_27], %37 {strides = array<i32>} : memref<32x512xf32, #tpu.memory_space<vmem>>, vector<32x512xf32>,
    return
  }
  func.func @transform_0(%arg0: i32) -> (i32, i32) {
    %c0_i32 = arith.constant 0 : i32
    %c0_i32_0 = arith.constant 0 : i32
    %c0_i32_1 = arith.constant 0 : i32
    return %c0_i32, %c0_i32_0 : i32, i32
  }
  func.func @transform_1(%arg0: i32) -> (i32, i32) {
    %c0_i32 = arith.constant 0 : i32
    %c0_i32_0 = arith.constant 0 : i32
    %c0_i32_1 = arith.constant 0 : i32
    return %c0_i32, %c0_i32_0 : i32, i32
  }
  func.func @transform_2(%arg0: i32) -> (i32, i32) {
    %c0_i32 = arith.constant 0 : i32
    %c0_i32_0 = arith.constant 0 : i32
    %c0_i32_1 = arith.constant 0 : i32
    return %c0_i32, %c0_i32_0 : i32, i32
  }
  func.func @transform_3(%arg0: i32) -> (i32, i32) {
    %c0_i32 = arith.constant 0 : i32
    %c0_i32_0 = arith.constant 0 : i32
    %c0_i32_1 = arith.constant 0 : i32
    return %c0_i32, %c0_i32_0 : i32, i32
  }
  func.func @transform_4(%arg0: i32) -> (i32, i32) {
    %c0_i32 = arith.constant 0 : i32
    %c0_i32_0 = arith.constant 0 : i32
    %c0_i32_1 = arith.constant 0 : i32
    return %c0_i32, %c0_i32_0 : i32, i32
  }
  func.func @transform_5(%arg0: i32) -> (i32, i32) {
    %c0_i32 = arith.constant 0 : i32
    %c0_i32_0 = arith.constant 0 : i32
    %c0_i32_1 = arith.constant 0 : i32
    return %c0_i32, %c0_i32_0 : i32, i32
  }
  func.func @transform_6(%arg0: i32) -> (i32, i32) {
    %c0_i32 = arith.constant 0 : i32
    %c0_i32_0 = arith.constant 0 : i32
    %c0_i32_1 = arith.constant 0 : i32
    return %c0_i32, %c0_i32_0 : i32, i32
  }
}

</mosaic_0001>

<bundles_post_ra>
// kernel: conv_upsample_forward.1
= control target key start
LH: loop header
LB: loop body
LE: loop exit
PB: predicated region body
PF: predicated region fallthrough
CT: control target
= control target key end

     0   :  { %vm127_vm0 = vcmask 523264   ;;  %vm766_vm1 = vcmask 64512   ;;  %s2374_s1 = inlined_call_operand.vmem [shape: f32[192,512], index: 1, kind: input, shape index: {}]   ;;  %s2375_s0 = inlined_call_operand.vmem [shape: f32[32,192], index: 0, kind: input, shape index: {}]   ;;  %s2376_s2 = inlined_call_operand.vmem [shape: f32[512,8], index: 2, kind: input, shape index: {}]   ;;  %s2377_s3 = inlined_call_operand.vmem [shape: f32[8,512], index: 3, kind: input, shape index: {}]   ;;  %s2378_s4 = inlined_call_operand.vmem [shape: f32[1,8], index: 4, kind: input, shape index: {}]   ;;  %s2379_s5 = inlined_call_operand.vmem [shape: f32[1,8], index: 5, kind: input, shape index: {}]   ;;  %s2380_s6 = inlined_call_operand.vmem [shape: f32[32,512], index: 6, kind: output, shape index: {}]  }
   0x1   :  { %v32_v0 = vld [vmem:[%s2374_s1 + $0x8] sm:$0xff]  ;;  %v34_v2 = vld [vmem:[%s2374_s1 + $0x18] sm:$0xff]  ;;  %v31_v5 = vld [vmem:[%s2374_s1] sm:$0xff] }
   0x2   :  { %v36_v1 = vld [vmem:[%s2374_s1 + $0x28] sm:$0xff]  ;;  %v38_v4 = vld [vmem:[%s2374_s1 + $0x38] sm:$0xff]  ;;  %v35_v6 = vld [vmem:[%s2374_s1 + $0x20] sm:$0xff] }
   0x3   :  { %v1309_v3 = vpack.c.bf16 %v36_v1, %v32_v0  ;;  %v1357_v7 = vpack.c.bf16 %v38_v4, %v34_v2  ;;  %v1311_v8 = vpack.c.bf16 %v35_v6, %v31_v5  ;;  %v33_v9 = vld [vmem:[%s2374_s1 + $0x10] sm:$0xff]  ;;  %v40_v11 = vld [vmem:[%s2374_s1 + $0x48] sm:$0xff]  ;;  %v42_v14 = vld [vmem:[%s2374_s1 + $0x58] sm:$0xff] }
   0x4   :  { %v37_v10 = vld [vmem:[%s2374_s1 + $0x30] sm:$0xff]  ;;  %v44_v13 = vld [vmem:[%s2374_s1 + $0x68] sm:$0xff]  ;;  %v46_v15 = vld [vmem:[%s2374_s1 + $0x78] sm:$0xff] }
   0x5   :  { %1310 = vmatprep.subr.bf16.mxu0 %v1309_v3  ;;  %v1359_v12 = vpack.c.bf16 %v37_v10, %v33_v9  ;;  %1358 = vmatprep.subr.bf16.mxu1 %v1357_v7  ;;  %v1313_v16 = vpack.c.bf16 %v44_v13, %v40_v11  ;;  %v1361_v17 = vpack.c.bf16 %v46_v15, %v42_v14  ;;  %v39_v18 = vld [vmem:[%s2374_s1 + $0x40] sm:$0xff]  ;;  %v41_v20 = vld [vmem:[%s2374_s1 + $0x50] sm:$0xff]  ;;  %v48_v23 = vld [vmem:[%s2374_s1 + $0x88] sm:$0xff] }
   0x6   :  { %1312 = vmatpush1.bf16.msra.mxu0 %v1311_v8  ;;  %v43_v19 = vld [vmem:[%s2374_s1 + $0x60] sm:$0xff]  ;;  %v45_v22 = vld [vmem:[%s2374_s1 + $0x70] sm:$0xff]  ;;  %v52_v24 = vld [vmem:[%s2374_s1 + $0xa8] sm:$0xff] }
   0x7   :  { %1360 = vmatpush1.bf16.msra.mxu1 %v1359_v12  ;;  %v1315_v21 = vpack.c.bf16 %v43_v19, %v39_v18  ;;  %1314 = vmatprep.subr.bf16.mxu0 %v1313_v16  ;;  %v1363_v25 = vpack.c.bf16 %v45_v22, %v41_v20  ;;  %v1317_v26 = vpack.c.bf16 %v52_v24, %v48_v23  ;;  %v50_v27 = vld [vmem:[%s2374_s1 + $0x98] sm:$0xff]  ;;  %v47_v29 = vld [vmem:[%s2374_s1 + $0x80] sm:$0xff]  ;;  %v49_v32 = vld [vmem:[%s2374_s1 + $0x90] sm:$0xff] }
   0x8   :  { %1362 = vmatprep.subr.bf16.mxu1 %v1361_v17  ;;  %v54_v28 = vld [vmem:[%s2374_s1 + $0xb8] sm:$0xff]  ;;  %v51_v31 = vld [vmem:[%s2374_s1 + $0xa0] sm:$0xff]  ;;  %v53_v33 = vld [vmem:[%s2374_s1 + $0xb0] sm:$0xff] }
   0x9   :  { %v1365_v30 = vpack.c.bf16 %v54_v28, %v50_v27  ;;  %v1319_v34 = vpack.c.bf16 %v51_v31, %v47_v29  ;;  %v56_v35 = vld [vmem:[%s2374_s1 + $0xc8] sm:$0xff]  ;;  %v58_v37 = vld [vmem:[%s2374_s1 + $0xd8] sm:$0xff]  ;;  %v1367_v38 = vpack.c.bf16 %v53_v33, %v49_v32  ;;  %v55_v41 = vld [vmem:[%s2374_s1 + $0xc0] sm:$0xff] }
   0xa   :  { %1316 = vmatpush1.bf16.msra.mxu0 %v1315_v21  ;;  %v60_v36 = vld [vmem:[%s2374_s1 + $0xe8] sm:$0xff]  ;;  %v62_v40 = vld [vmem:[%s2374_s1 + $0xf8] sm:$0xff]  ;;  %v59_v42 = vld [vmem:[%s2374_s1 + $0xe0] sm:$0xff] }
   0xb   :  { %1364 = vmatpush1.bf16.msra.mxu1 %v1363_v25  ;;  %1318 = vmatprep.subr.bf16.mxu0 %v1317_v26  ;;  %v1321_v39 = vpack.c.bf16 %v60_v36, %v56_v35  ;;  %v1369_v43 = vpack.c.bf16 %v62_v40, %v58_v37  ;;  %v57_v44 = vld [vmem:[%s2374_s1 + $0xd0] sm:$0xff]  ;;  %v64_v46 = vld [vmem:[%s2374_s1 + $0x108] sm:$0xff]  ;;  %v66_v48 = vld [vmem:[%s2374_s1 + $0x118] sm:$0xff]  ;;  %v1323_v50 = vpack.c.bf16 %v59_v42, %v55_v41 }
   0xc   :  { %1366 = vmatprep.subr.bf16.mxu1 %v1365_v30  ;;  %v61_v45 = vld [vmem:[%s2374_s1 + $0xf0] sm:$0xff]  ;;  %v68_v47 = vld [vmem:[%s2374_s1 + $0x128] sm:$0xff]  ;;  %v70_v49 = vld [vmem:[%s2374_s1 + $0x138] sm:$0xff] }
   0xd   :  { %v1371_v51 = vpack.c.bf16 %v61_v45, %v57_v44  ;;  %v1325_v52 = vpack.c.bf16 %v68_v47, %v64_v46  ;;  %v63_v53 = vld [vmem:[%s2374_s1 + $0x100] sm:$0xff]  ;;  %v65_v55 = vld [vmem:[%s2374_s1 + $0x110] sm:$0xff]  ;;  %v1373_v56 = vpack.c.bf16 %v70_v49, %v66_v48  ;;  %v72_v58 = vld [vmem:[%s2374_s1 + $0x148] sm:$0xff] }
   0xe   :  { %1320 = vmatpush1.bf16.msra.mxu0 %v1319_v34  ;;  %v67_v54 = vld [vmem:[%s2374_s1 + $0x120] sm:$0xff]  ;;  %v69_v57 = vld [vmem:[%s2374_s1 + $0x130] sm:$0xff]  ;;  %v76_v59 = vld [vmem:[%s2374_s1 + $0x168] sm:$0xff] }
   0xf   :  { %1368 = vmatpush1.bf16.msra.mxu1 %v1367_v38  ;;  %1322 = vmatprep.subr.bf16.mxu0 %v1321_v39  ;;  %v74_v60 = vld [vmem:[%s2374_s1 + $0x158] sm:$0xff]  ;;  %v1327_v62 = vpack.c.bf16 %v67_v54, %v63_v53  ;;  %v1375_v63 = vpack.c.bf16 %v69_v57, %v65_v55  ;;  %v1329_v0 = vpack.c.bf16 %v76_v59, %v72_v58  ;;  %v71_v1 = vld [vmem:[%s2374_s1 + $0x140] sm:$0xff]  ;;  %v73_v3 = vld [vmem:[%s2374_s1 + $0x150] sm:$0xff] }
  0x10   :  { %1370 = vmatprep.subr.bf16.mxu1 %v1369_v43  ;;  %v78_v61 = vld [vmem:[%s2374_s1 + $0x178] sm:$0xff]  ;;  %v75_v2 = vld [vmem:[%s2374_s1 + $0x160] sm:$0xff]  ;;  %v77_v5 = vld [vmem:[%s2374_s1 + $0x170] sm:$0xff] }
  0x11   :  { %v1377_v4 = vpack.c.bf16 %v78_v61, %v74_v60  ;;  %v80_v6 = vld [vmem:[%s2374_s1 + $0x188] sm:$0xff]  ;;  %v82_v8 = vld [vmem:[%s2374_s1 + $0x198] sm:$0xff]  ;;  %v1331_v10 = vpack.c.bf16 %v75_v2, %v71_v1  ;;  %v1379_v11 = vpack.c.bf16 %v77_v5, %v73_v3  ;;  %v79_v13 = vld [vmem:[%s2374_s1 + $0x180] sm:$0xff] }
  0x12   :  { %1324 = vmatpush1.bf16.msra.mxu0 %v1323_v50  ;;  %v84_v7 = vld [vmem:[%s2374_s1 + $0x1a8] sm:$0xff]  ;;  %v86_v9 = vld [vmem:[%s2374_s1 + $0x1b8] sm:$0xff]  ;;  %v83_v14 = vld [vmem:[%s2374_s1 + $0x1a0] sm:$0xff] }
  0x13   :  { %1372 = vmatpush1.bf16.msra.mxu1 %v1371_v51  ;;  %1326 = vmatprep.subr.bf16.mxu0 %v1325_v52  ;;  %v1333_v12 = vpack.c.bf16 %v84_v7, %v80_v6  ;;  %v81_v15 = vld [vmem:[%s2374_s1 + $0x190] sm:$0xff]  ;;  %v1381_v16 = vpack.c.bf16 %v86_v9, %v82_v8  ;;  %v88_v18 = vld [vmem:[%s2374_s1 + $0x1c8] sm:$0xff]  ;;  %v90_v20 = vld [vmem:[%s2374_s1 + $0x1d8] sm:$0xff]  ;;  %v1335_v22 = vpack.c.bf16 %v83_v14, %v79_v13 }
  0x14   :  { %1374 = vmatprep.subr.bf16.mxu1 %v1373_v56  ;;  %v85_v17 = vld [vmem:[%s2374_s1 + $0x1b0] sm:$0xff]  ;;  %v92_v19 = vld [vmem:[%s2374_s1 + $0x1e8] sm:$0xff]  ;;  %v94_v21 = vld [vmem:[%s2374_s1 + $0x1f8] sm:$0xff] }
  0x15   :  { %v1383_v23 = vpack.c.bf16 %v85_v17, %v81_v15  ;;  %v1337_v24 = vpack.c.bf16 %v92_v19, %v88_v18  ;;  %v87_v25 = vld [vmem:[%s2374_s1 + $0x1c0] sm:$0xff]  ;;  %v89_v27 = vld [vmem:[%s2374_s1 + $0x1d0] sm:$0xff]  ;;  %v1385_v28 = vpack.c.bf16 %v94_v21, %v90_v20  ;;  %v96_v30 = vld [vmem:[%s2374_s1 + $0x208] sm:$0xff] }
  0x16   :  { %1328 = vmatpush1.bf16.msra.mxu0 %v1327_v62  ;;  %v91_v26 = vld [vmem:[%s2374_s1 + $0x1e0] sm:$0xff]  ;;  %v93_v29 = vld [vmem:[%s2374_s1 + $0x1f0] sm:$0xff]  ;;  %v100_v31 = vld [vmem:[%s2374_s1 + $0x228] sm:$0xff] }
  0x17   :  { %1376 = vmatpush1.bf16.msra.mxu1 %v1375_v63  ;;  %1330 = vmatprep.subr.bf16.mxu0 %v1329_v0  ;;  %v98_v32 = vld [vmem:[%s2374_s1 + $0x218] sm:$0xff]  ;;  %v1339_v34 = vpack.c.bf16 %v91_v26, %v87_v25  ;;  %v1387_v35 = vpack.c.bf16 %v93_v29, %v89_v27  ;;  %v1341_v36 = vpack.c.bf16 %v100_v31, %v96_v30  ;;  %v95_v37 = vld [vmem:[%s2374_s1 + $0x200] sm:$0xff]  ;;  %v97_v39 = vld [vmem:[%s2374_s1 + $0x210] sm:$0xff] }
  0x18   :  { %1378 = vmatprep.subr.bf16.mxu1 %v1377_v4  ;;  %v102_v33 = vld [vmem:[%s2374_s1 + $0x238] sm:$0xff]  ;;  %v99_v38 = vld [vmem:[%s2374_s1 + $0x220] sm:$0xff]  ;;  %v101_v41 = vld [vmem:[%s2374_s1 + $0x230] sm:$0xff] }
  0x19   :  { %v1389_v40 = vpack.c.bf16 %v102_v33, %v98_v32  ;;  %v104_v42 = vld [vmem:[%s2374_s1 + $0x248] sm:$0xff]  ;;  %v106_v44 = vld [vmem:[%s2374_s1 + $0x258] sm:$0xff]  ;;  %v1343_v46 = vpack.c.bf16 %v99_v38, %v95_v37  ;;  %v1391_v48 = vpack.c.bf16 %v101_v41, %v97_v39  ;;  %v103_v50 = vld [vmem:[%s2374_s1 + $0x240] sm:$0xff] }
  0x1a   :  { %1332 = vmatpush1.bf16.msra.mxu0 %v1331_v10  ;;  %v108_v43 = vld [vmem:[%s2374_s1 + $0x268] sm:$0xff]  ;;  %v110_v45 = vld [vmem:[%s2374_s1 + $0x278] sm:$0xff]  ;;  %v107_v51 = vld [vmem:[%s2374_s1 + $0x260] sm:$0xff] }
  0x1b   :  { %1380 = vmatpush1.bf16.msra.mxu1 %v1379_v11  ;;  %1334 = vmatprep.subr.bf16.mxu0 %v1333_v12  ;;  %v24_v47 = vld [vmem:[%s2375_s0 + $0x8] sm:$0xff]  ;;  %v1345_v49 = vpack.c.bf16 %v108_v43, %v104_v42  ;;  %v105_v52 = vld [vmem:[%s2374_s1 + $0x250] sm:$0xff]  ;;  %v1393_v53 = vpack.c.bf16 %v110_v45, %v106_v44  ;;  %v114_v57 = vld [vmem:[%s2374_s1 + $0x298] sm:$0xff]  ;;  %v1347_v59 = vpack.c.bf16 %v107_v51, %v103_v50 }
  0x1c   :  { %1382 = vmatprep.subr.bf16.mxu1 %v1381_v16  ;;  %v109_v54 = vld [vmem:[%s2374_s1 + $0x270] sm:$0xff]  ;;  %v112_v55 = vld [vmem:[%s2374_s1 + $0x288] sm:$0xff]  ;;  %1157 = vmatprep.mubr.msk.f32.mxu0 %vm127_vm0, %v24_v47  ;;  %v118_v58 = vld [vmem:[%s2374_s1 + $0x2b8] sm:$0xff] }
  0x1d   :  { %v116_v56 = vld [vmem:[%s2374_s1 + $0x2a8] sm:$0xff]  ;;  %1161 = vmatprep.mubr.msk.f32.mxu1 %vm127_vm0, %v24_v47  ;;  %v1395_v60 = vpack.c.bf16 %v109_v54, %v105_v52  ;;  %v111_v62 = vld [vmem:[%s2374_s1 + $0x280] sm:$0xff]  ;;  %v113_v0 = vld [vmem:[%s2374_s1 + $0x290] sm:$0xff]  ;;  %v1397_v1 = vpack.c.bf16 %v118_v58, %v114_v57 }
  0x1e   :  { %1336 = vmatpush1.bf16.msra.mxu0 %v1335_v22  ;;  %v1349_v61 = vpack.c.bf16 %v116_v56, %v112_v55  ;;  %v115_v63 = vld [vmem:[%s2374_s1 + $0x2a0] sm:$0xff]  ;;  %v117_v2 = vld [vmem:[%s2374_s1 + $0x2b0] sm:$0xff]  ;;  %v120_v3 = vld [vmem:[%s2374_s1 + $0x2c8] sm:$0xff] }
  0x1f   :  { %1384 = vmatpush1.bf16.msra.mxu1 %v1383_v23  ;;  %1338 = vmatprep.subr.bf16.mxu0 %v1337_v24  ;;  %v124_v4 = vld [vmem:[%s2374_s1 + $0x2e8] sm:$0xff]  ;;  %v122_v5 = vld [vmem:[%s2374_s1 + $0x2d8] sm:$0xff]  ;;  %v1351_v7 = vpack.c.bf16 %v115_v63, %v111_v62  ;;  %v1399_v8 = vpack.c.bf16 %v117_v2, %v113_v0  ;;  %v119_v10 = vld [vmem:[%s2374_s1 + $0x2c0] sm:$0xff] }
  0x20   :  { %1386 = vmatprep.subr.bf16.mxu1 %v1385_v28  ;;  %v126_v6 = vld [vmem:[%s2374_s1 + $0x2f8] sm:$0xff]  ;;  %v1353_v9 = vpack.c.bf16 %v124_v4, %v120_v3  ;;  %v123_v11 = vld [vmem:[%s2374_s1 + $0x2e0] sm:$0xff]  ;;  %v121_v12 = vld [vmem:[%s2374_s1 + $0x2d0] sm:$0xff] }
  0x21   :  { %v1401_v13 = vpack.c.bf16 %v126_v6, %v122_v5  ;;  %v125_v14 = vld [vmem:[%s2374_s1 + $0x2f0] sm:$0xff]  ;;  %v422_v15 = vld [vmem:[%s2376_s2 + $0x80] sm:$0xff]  ;;  %v423_v16 = vld [vmem:[%s2376_s2 + $0x88] sm:$0xff]  ;;  %v1355_v19 = vpack.c.bf16 %v123_v11, %v119_v10 }
  0x22   :  { %1340 = vmatpush1.bf16.msra.mxu0 %v1339_v34  ;;  %v454_v17 = vld [vmem:[%s2376_s2 + $0x180] sm:$0xff]  ;;  %v455_v18 = vld [vmem:[%s2376_s2 + $0x188] sm:$0xff]  ;;  %v1403_v20 = vpack.c.bf16 %v125_v14, %v121_v12  ;;  %v1877_v21 = vpack.c.bf16 %v423_v16, %v422_v15  ;;  %v26_v28 = vld [vmem:[%s2375_s0 + $0x18] sm:$0xff] }
  0x23   :  { %1388 = vmatpush1.bf16.msra.mxu1 %v1387_v35  ;;  %1342 = vmatprep.subr.bf16.mxu0 %v1341_v36  ;;  %v1879_v22 = vpack.c.bf16 %v455_v18, %v454_v17  ;;  %v406_v23 = vld [vmem:[%s2376_s2] sm:$0xff]  ;;  %v407_v24 = vld [vmem:[%s2376_s2 + $0x8] sm:$0xff]  ;;  %v25_v31 = vld [vmem:[%s2375_s0 + $0x10] sm:$0xff] }
  0x24   :  { %1390 = vmatprep.subr.bf16.mxu1 %v1389_v40  ;;  %v438_v25 = vld [vmem:[%s2376_s2 + $0x100] sm:$0xff]  ;;  %v439_v26 = vld [vmem:[%s2376_s2 + $0x108] sm:$0xff]  ;;  %v1900_v29 = vpack.c.bf16 %v407_v24, %v406_v23  ;;  %v30_v34 = vld [vmem:[%s2375_s0 + $0x38] sm:$0xff] }
  0x25   :  { %v23_v27 = vld [vmem:[%s2375_s0] sm:$0xff]  ;;  %v1903_v30 = vpack.c.bf16 %v439_v26, %v438_v25  ;;  %v28_v32 = vld [vmem:[%s2375_s0 + $0x28] sm:$0xff]  ;;  %v29_v35 = vld [vmem:[%s2375_s0 + $0x30] sm:$0xff] }
  0x26   :  { %1344 = vmatpush1.bf16.msra.mxu0 %v1343_v46  ;;  %v27_v33 = vld [vmem:[%s2375_s0 + $0x20] sm:$0xff]  ;;  %v424_v36 = vld [vmem:[%s2376_s2 + $0x90] sm:$0xff]  ;;  %v425_v37 = vld [vmem:[%s2376_s2 + $0x98] sm:$0xff] }
  0x27   :  { %1392 = vmatpush1.bf16.msra.mxu1 %v1391_v48  ;;  %1346 = vmatprep.subr.bf16.mxu0 %v1345_v49  ;;  %v456_v38 = vld [vmem:[%s2376_s2 + $0x190] sm:$0xff]  ;;  %v1937_v39 = vpack.c.bf16 %v425_v37, %v424_v36  ;;  %v457_v40 = vld [vmem:[%s2376_s2 + $0x198] sm:$0xff]  ;;  %v426_v48 = vld [vmem:[%s2376_s2 + $0xa0] sm:$0xff] }
  0x28   :  { %1394 = vmatprep.subr.bf16.mxu1 %v1393_v53  ;;  %v408_v41 = vld [vmem:[%s2376_s2 + $0x10] sm:$0xff]  ;;  %v409_v42 = vld [vmem:[%s2376_s2 + $0x18] sm:$0xff]  ;;  %v1948_v43 = vpack.c.bf16 %v457_v40, %v456_v38  ;;  %v427_v49 = vld [vmem:[%s2376_s2 + $0xa8] sm:$0xff] }
  0x29   :  { %v1950_v44 = vpack.c.bf16 %v409_v42, %v408_v41  ;;  %v440_v45 = vld [vmem:[%s2376_s2 + $0x110] sm:$0xff]  ;;  %v441_v46 = vld [vmem:[%s2376_s2 + $0x118] sm:$0xff]  ;;  %v458_v50 = vld [vmem:[%s2376_s2 + $0x1a0] sm:$0xff]  ;;  %v1973_v51 = vpack.c.bf16 %v427_v49, %v426_v48 }
  0x2a   :  { %1348 = vmatpush1.bf16.msra.mxu0 %v1347_v59  ;;  %v1959_v47 = vpack.c.bf16 %v441_v46, %v440_v45  ;;  %v459_v52 = vld [vmem:[%s2376_s2 + $0x1a8] sm:$0xff]  ;;  %v410_v53 = vld [vmem:[%s2376_s2 + $0x20] sm:$0xff]  ;;  %v460_v62 = vld [vmem:[%s2376_s2 + $0x1b0] sm:$0xff] }
  0x2b   :  { %1396 = vmatpush1.bf16.msra.mxu1 %v1395_v60  ;;  %1350 = vmatprep.subr.bf16.mxu0 %v1349_v61  ;;  %v411_v54 = vld [vmem:[%s2376_s2 + $0x28] sm:$0xff]  ;;  %v1984_v55 = vpack.c.bf16 %v459_v52, %v458_v50  ;;  %v442_v57 = vld [vmem:[%s2376_s2 + $0x120] sm:$0xff]  ;;  %v428_v60 = vld [vmem:[%s2376_s2 + $0xb0] sm:$0xff] }
  0x2c   :  { %1398 = vmatprep.subr.bf16.mxu1 %v1397_v1  ;;  %v1986_v56 = vpack.c.bf16 %v411_v54, %v410_v53  ;;  %v443_v58 = vld [vmem:[%s2376_s2 + $0x128] sm:$0xff]  ;;  %v429_v61 = vld [vmem:[%s2376_s2 + $0xb8] sm:$0xff]  ;;  %v412_v1 = vld [vmem:[%s2376_s2 + $0x30] sm:$0xff] }
  0x2d   :  { %v1995_v59 = vpack.c.bf16 %v443_v58, %v442_v57  ;;  %v2009_v63 = vpack.c.bf16 %v429_v61, %v428_v60  ;;  %v461_v0 = vld [vmem:[%s2376_s2 + $0x1b8] sm:$0xff]  ;;  %v444_v5 = vld [vmem:[%s2376_s2 + $0x130] sm:$0xff]  ;;  %v462_v10 = vld [vmem:[%s2376_s2 + $0x1c0] sm:$0xff] }
  0x2e   :  { %1352 = vmatpush1.bf16.msra.mxu0 %v1351_v7  ;;  %v413_v2 = vld [vmem:[%s2376_s2 + $0x38] sm:$0xff]  ;;  %v2020_v3 = vpack.c.bf16 %v461_v0, %v460_v62  ;;  %v463_v12 = vld [vmem:[%s2376_s2 + $0x1c8] sm:$0xff]  ;;  %v446_v17 = vld [vmem:[%s2376_s2 + $0x140] sm:$0xff] }
  0x2f   :  { %1400 = vmatpush1.bf16.msra.mxu1 %v1399_v8  ;;  %1354 = vmatprep.subr.bf16.mxu0 %v1353_v9  ;;  %v2022_v4 = vpack.c.bf16 %v413_v2, %v412_v1  ;;  %v445_v6 = vld [vmem:[%s2376_s2 + $0x138] sm:$0xff]  ;;  %v430_v8 = vld [vmem:[%s2376_s2 + $0xc0] sm:$0xff]  ;;  %v431_v9 = vld [vmem:[%s2376_s2 + $0xc8] sm:$0xff]  ;;  %v2056_v15 = vpack.c.bf16 %v463_v12, %v462_v10 }
  0x30   :  { %1402 = vmatprep.subr.bf16.mxu1 %v1401_v13  ;;  %v2031_v7 = vpack.c.bf16 %v445_v6, %v444_v5  ;;  %v2045_v11 = vpack.c.bf16 %v431_v9, %v430_v8  ;;  %v414_v13 = vld [vmem:[%s2376_s2 + $0x40] sm:$0xff]  ;;  %v415_v14 = vld [vmem:[%s2376_s2 + $0x48] sm:$0xff]  ;;  %v433_v23 = vld [vmem:[%s2376_s2 + $0xd8] sm:$0xff] }
  0x31   :  { %v2058_v16 = vpack.c.bf16 %v415_v14, %v414_v13  ;;  %v447_v18 = vld [vmem:[%s2376_s2 + $0x148] sm:$0xff]  ;;  %v464_v24 = vld [vmem:[%s2376_s2 + $0x1d0] sm:$0xff]  ;;  %v465_v26 = vld [vmem:[%s2376_s2 + $0x1d8] sm:$0xff] }
  0x32   :  { %1356 = vmatpush1.bf16.msra.mxu0 %v1355_v19  ;;  %v2067_v19 = vpack.c.bf16 %v447_v18, %v446_v17  ;;  %v434_v36 = vld [vmem:[%s2376_s2 + $0xe0] sm:$0xff]  ;;  %v435_v37 = vld [vmem:[%s2376_s2 + $0xe8] sm:$0xff]  ;;  %v436_v53 = vld [vmem:[%s2376_s2 + $0xf0] sm:$0xff] }
  0x33   :  { %1404 = vmatpush1.bf16.msra.mxu1 %v1403_v20  ;;  %1406 = vmatprep.subr.bf16.mxu0 %v1877_v21  ;;  %v432_v20 = vld [vmem:[%s2376_s2 + $0xd0] sm:$0xff]  ;;  %v466_v38 = vld [vmem:[%s2376_s2 + $0x1e0] sm:$0xff]  ;;  %v2117_v40 = vpack.c.bf16 %v435_v37, %v434_v36  ;;  %v467_v41 = vld [vmem:[%s2376_s2 + $0x1e8] sm:$0xff] }
  0x34   :  { %1438 = vmatprep.subr.bf16.mxu1 %v1879_v22  ;;  %v2081_v25 = vpack.c.bf16 %v433_v23, %v432_v20  ;;  %v418_v42 = vld [vmem:[%s2376_s2 + $0x60] sm:$0xff]  ;;  %v419_v45 = vld [vmem:[%s2376_s2 + $0x68] sm:$0xff]  ;;  %v2128_v46 = vpack.c.bf16 %v467_v41, %v466_v38  ;;  %v437_v54 = vld [vmem:[%s2376_s2 + $0xf8] sm:$0xff] }
  0x35   :  { %205 = vmatmul.mubr.f32.vlgmr.msra.gmra.mrb[0].mxu0 %v23_v27  ;;  %v2130_v48 = vpack.c.bf16 %v419_v45, %v418_v42  ;;  %v450_v49 = vld [vmem:[%s2376_s2 + $0x160] sm:$0xff]  ;;  %v451_v50 = vld [vmem:[%s2376_s2 + $0x168] sm:$0xff]  ;;  %v468_v57 = vld [vmem:[%s2376_s2 + $0x1f0] sm:$0xff]  ;;  %v2153_v58 = vpack.c.bf16 %v437_v54, %v436_v53 }
  0x36   :  { %294 = vmatmul.mubr.f32.vlgmr.msra.gmra.mrb[0].mxu1 %v23_v27  ;;  %1158 = vmatprep.mubr.msk.f32.mxu0 %vm127_vm0, %v26_v28  ;;  %v416_v27 = vld [vmem:[%s2376_s2 + $0x50] sm:$0xff]  ;;  %v2139_v52 = vpack.c.bf16 %v451_v50, %v450_v49  ;;  %v469_v60 = vld [vmem:[%s2376_s2 + $0x1f8] sm:$0xff] }
  0x37   :  { %1162 = vmatprep.mubr.msk.f32.mxu1 %vm127_vm0, %v26_v28  ;;  %1408 = vmatpush3.bf16.msra.mxu0 %v1900_v29  ;;  %v417_v28 = vld [vmem:[%s2376_s2 + $0x58] sm:$0xff]  ;;  %v420_v61 = vld [vmem:[%s2376_s2 + $0x70] sm:$0xff]  ;;  %v2164_v0 = vpack.c.bf16 %v469_v60, %v468_v57 }
  0x38   :  { %1440 = vmatpush3.bf16.msra.mxu1 %v1903_v30  ;;  %1410 = vmatprep.subr.bf16.mxu0 %v1937_v39  ;;  %v421_v62 = vld [vmem:[%s2376_s2 + $0x78] sm:$0xff]  ;;  %v452_v2 = vld [vmem:[%s2376_s2 + $0x170] sm:$0xff] }
  0x39   :  { %211 = vmatmul.mubr.f32.gmra.mrb[2].mxu0 %v25_v31  ;;  %1442 = vmatprep.subr.bf16.mxu1 %v1948_v43  ;;  %v2166_v1 = vpack.c.bf16 %v421_v62, %v420_v61  ;;  %v453_v5 = vld [vmem:[%s2376_s2 + $0x178] sm:$0xff] }
  0x3a   :  { %300 = vmatmul.mubr.f32.gmra.mrb[2].mxu1 %v25_v31  ;;  %1159 = vmatprep.mubr.msk.f32.mxu0 %vm127_vm0, %v28_v32  ;;  %v2092_v31 = vpack.c.bf16 %v465_v26, %v464_v24  ;;  %v2175_v6 = vpack.c.bf16 %v453_v5, %v452_v2 }
  0x3b   :  { %1163 = vmatprep.mubr.msk.f32.mxu1 %vm127_vm0, %v28_v32  ;;  %1412 = vmatpush3.bf16.msra.mxu0 %v1950_v44  ;;  %v2094_v32 = vpack.c.bf16 %v417_v28, %v416_v27 }
  0x3c   :  { %1444 = vmatpush3.bf16.msra.mxu1 %v1959_v47  ;;  %1414 = vmatprep.subr.bf16.mxu0 %v1973_v51 }
  0x3d   :  { %217 = vmatmul.mubr.f32.gmra.mrb[4].mxu0 %v27_v33  ;;  %1446 = vmatprep.subr.bf16.mxu1 %v1984_v55 }
  0x3e   :  { %306 = vmatmul.mubr.f32.gmra.mrb[4].mxu1 %v27_v33  ;;  %1160 = vmatprep.mubr.msk.f32.mxu0 %vm127_vm0, %v30_v34  ;;  %v448_v33 = vld [vmem:[%s2376_s2 + $0x150] sm:$0xff] }
  0x3f   :  { %1164 = vmatprep.mubr.msk.f32.mxu1 %vm127_vm0, %v30_v34  ;;  %1416 = vmatpush3.bf16.msra.mxu0 %v1986_v56  ;;  %v449_v34 = vld [vmem:[%s2376_s2 + $0x158] sm:$0xff] }
  0x40   :  { %1448 = vmatpush3.bf16.msra.mxu1 %v1995_v59  ;;  %1418 = vmatprep.subr.bf16.mxu0 %v2009_v63 }
  0x41   :  { %223 = vmatmul.mubr.f32.gmra.mrb[6].mxu0 %v29_v35  ;;  %1450 = vmatprep.subr.bf16.mxu1 %v2020_v3 }
  0x42   :  { %312 = vmatmul.mubr.f32.gmra.mrb[6].mxu1 %v29_v35  ;;  %v2103_v35 = vpack.c.bf16 %v449_v34, %v448_v33 }
  0x43   :  { %1420 = vmatpush3.bf16.msra.mxu0 %v2022_v4 }
  0x44   :  { %1452 = vmatpush3.bf16.msra.mxu1 %v2031_v7  ;;  %1422 = vmatprep.subr.bf16.mxu0 %v2045_v11 }
  0x45   :  { %1454 = vmatprep.subr.bf16.mxu1 %v2056_v15 }
  0x47   :  { %1424 = vmatpush3.bf16.msra.mxu0 %v2058_v16 }
  0x48   :  { %1456 = vmatpush3.bf16.msra.mxu1 %v2067_v19  ;;  %1426 = vmatprep.subr.bf16.mxu0 %v2081_v25 }
  0x49   :  { %1458 = vmatprep.subr.bf16.mxu1 %v2092_v31 }
  0x4b   :  { %1428 = vmatpush3.bf16.msra.mxu0 %v2094_v32 }
  0x4c   :  { %1460 = vmatpush3.bf16.msra.mxu1 %v2103_v35  ;;  %1430 = vmatprep.subr.bf16.mxu0 %v2117_v40 }
  0x4d   :  { %1462 = vmatprep.subr.bf16.mxu1 %v2128_v46 }
  0x4f   :  { %1432 = vmatpush3.bf16.msra.mxu0 %v2130_v48 }
  0x50   :  { %1464 = vmatpush3.bf16.msra.mxu1 %v2139_v52  ;;  %1434 = vmatprep.subr.bf16.mxu0 %v2153_v58 }
  0x51   :  { %1466 = vmatprep.subr.bf16.mxu1 %v2164_v0 }
  0x53   :  { %1436 = vmatpush3.bf16.msra.mxu0 %v2166_v1 }
  0x54   :  { %1468 = vmatpush3.bf16.msra.mxu1 %v2175_v6  ;;  %1470 = vmatprep.subr.bf16.mxu0 %v1877_v21 }
  0x55   :  { %1502 = vmatprep.subr.bf16.mxu1 %v1879_v22 }
 0x108   :  { %v2182_v8 = vpop.f32.mrb[0].mxu0 }
 0x109   :  { %v2184_v9 = vpop.f32.mrb[0].mxu1  ;;  %v2186_v10 = vpop.f32.mrb[1].mxu0  ;;  %v354_v13 = vmul.f32 %v2182_v8, %v2182_v8 }
 0x10a   :  { %2396 = vst [vmem:[#allocation2_spill] sm:$0xff] %v2184_v9  ;;  %2397 = vst [vmem:[#allocation3_spill] sm:$0xff] %v2186_v10  ;;  %v2188_v12 = vpop.f32.mrb[1].mxu1  ;;  %v356_v17 = vmul.f32 %v2184_v9, %v2184_v9  ;;  %v355_v21 = vmul.f32 %v2186_v10, %v2186_v10 }
 0x10b   :  { %2398 = vst [vmem:[#allocation4_spill] sm:$0xff] %v2188_v12  ;;  %v357_v34 = vmul.f32 %v2188_v12, %v2188_v12 }
 0x10c   :  { %v2192_v14 = vpop.f32.mrb[2].mxu0 }
 0x10d   :  { %2399 = vst [vmem:[#allocation5_spill] sm:$0xff] %v2192_v14  ;;  %v318_v22 = vadd.f32 %v2192_v14, %v2182_v8  ;;  %v358_v18 = vmul.f32 %v2192_v14, %v2192_v14  ;;  %v2202_v20 = vpop.f32.mrb[2].mxu1  ;;  %v2204_v23 = vpop.f32.mrb[3].mxu0 }
 0x10e   :  { %2400 = vst [vmem:[#allocation6_spill] sm:$0xff] %v2202_v20  ;;  %2401 = vst [vmem:[#allocation7_spill] sm:$0xff] %v2204_v23  ;;  %v336_v24 = vadd.f32 %v2202_v20, %v2184_v9  ;;  %v360_v26 = vmul.f32 %v2202_v20, %v2202_v20  ;;  %v327_v27 = vadd.f32 %v2204_v23, %v2186_v10  ;;  %v2214_v33 = vpop.f32.mrb[3].mxu1 }
 0x10f   :  { %v359_v28 = vmul.f32 %v2204_v23, %v2204_v23  ;;  %2402 = vst [vmem:[#allocation8_spill] sm:$0xff] %v2214_v33  ;;  %v370_v36 = vadd.f32 %v358_v18, %v354_v13  ;;  %v345_v37 = vadd.f32 %v2214_v33, %v2188_v12  ;;  %v361_v38 = vmul.f32 %v2214_v33, %v2214_v33 }
 0x110   :  { %v388_v41 = vadd.f32 %v360_v26, %v356_v17  ;;  %v2222_v45 = vpop.f32.mrb[4].mxu0 }
 0x111   :  { %v379_v42 = vadd.f32 %v359_v28, %v355_v21  ;;  %2403 = vst [vmem:[#allocation9_spill] sm:$0xff] %v2222_v45  ;;  %v397_v49 = vadd.f32 %v361_v38, %v357_v34  ;;  %v319_v50 = vadd.f32 %v318_v22, %v2222_v45  ;;  %v362_v53 = vmul.f32 %v2222_v45, %v2222_v45  ;;  %v2227_v54 = vpop.f32.mrb[4].mxu1  ;;  %v2229_v57 = vpop.f32.mrb[5].mxu0 }
 0x112   :  { %2404 = vst [vmem:[#allocation10_spill] sm:$0xff] %v2227_v54  ;;  %2405 = vst [vmem:[#allocation11_spill] sm:$0xff] %v2229_v57  ;;  %v337_v60 = vadd.f32 %v336_v24, %v2227_v54  ;;  %v364_v61 = vmul.f32 %v2227_v54, %v2227_v54  ;;  %v328_v62 = vadd.f32 %v327_v27, %v2229_v57  ;;  %v2237_v5 = vpop.f32.mrb[5].mxu1 }
 0x113   :  { %v363_v2 = vmul.f32 %v2229_v57, %v2229_v57  ;;  %2406 = vst [vmem:[#allocation12_spill] sm:$0xff] %v2237_v5  ;;  %v371_v13 = vadd.f32 %v370_v36, %v362_v53  ;;  %v346_v17 = vadd.f32 %v345_v37, %v2237_v5  ;;  %v365_v21 = vmul.f32 %v2237_v5, %v2237_v5 }
 0x114   :  { %v389_v22 = vadd.f32 %v388_v41, %v364_v61  ;;  %v2242_v26 = vpop.f32.mrb[6].mxu0 }
 0x115   :  { %v380_v18 = vadd.f32 %v379_v42, %v363_v2  ;;  %2407 = vst [vmem:[#allocation13_spill] sm:$0xff] %v2242_v26  ;;  %v398_v24 = vadd.f32 %v397_v49, %v365_v21  ;;  %v320_v28 = vadd.f32 %v319_v50, %v2242_v26  ;;  %v366_v27 = vmul.f32 %v2242_v26, %v2242_v26  ;;  %v2247_v34 = vpop.f32.mrb[6].mxu1  ;;  %v2249_v38 = vpop.f32.mrb[7].mxu0 }
 0x116   :  { %2408 = vst [vmem:[#allocation14_spill] sm:$0xff] %v2247_v34  ;;  %2409 = vst [vmem:[#allocation15_spill] sm:$0xff] %v2249_v38  ;;  %v338_v36 = vadd.f32 %v337_v60, %v2247_v34  ;;  %v368_v37 = vmul.f32 %v2247_v34, %v2247_v34  ;;  %v329_v41 = vadd.f32 %v328_v62, %v2249_v38  ;;  %v2257_v49 = vpop.f32.mrb[7].mxu1 }
 0x117   :  { %v367_v42 = vmul.f32 %v2249_v38, %v2249_v38  ;;  %2410 = vst [vmem:[#allocation16_spill] sm:$0xff] %v2257_v49  ;;  %v321_v50 = vrot.slane %v320_v28, 4  ;;  %v372_v53 = vadd.f32 %v371_v13, %v366_v27  ;;  %v347_v61 = vadd.f32 %v346_v17, %v2257_v49 }
 0x118   :  { %v369_v2 = vmul.f32 %v2257_v49, %v2257_v49  ;;  %v339_v21 = vrot.slane %v338_v36, 4  ;;  %v390_v5 = vadd.f32 %v389_v22, %v368_v37  ;;  %v330_v60 = vrot.slane %v329_v41, 4 }
 0x119   :  { %v381_v33 = vadd.f32 %v380_v18, %v367_v42  ;;  %v322_v12 = vadd.f32 %v321_v50, %v320_v28  ;;  %v348_v57 = vrot.slane %v347_v61, 4 }
 0x11a   :  { %v399_v23 = vadd.f32 %v398_v24, %v369_v2  ;;  %v340_v62 = vadd.f32 %v339_v21, %v338_v36  ;;  %v331_v10 = vadd.f32 %v330_v60, %v329_v41 }
 0x11b   :  { %v382_v34 = vrot.slane %v381_v33, 4  ;;  %v323_v38 = vrot.slane %v322_v12, 2  ;;  %v349_v54 = vadd.f32 %v348_v57, %v347_v61 }
 0x11c   :  { %v400_v20 = vrot.slane %v399_v23, 4  ;;  %v341_v9 = vrot.slane %v340_v62, 2  ;;  %v332_v13 = vrot.slane %v331_v10, 2 }
 0x11d   :  { %v383_v27 = vadd.f32 %v382_v34, %v381_v33  ;;  %v324_v17 = vadd.f32 %v323_v38, %v322_v12  ;;  %v350_v26 = vrot.slane %v349_v54, 2 }
 0x11e   :  { %v401_v45 = vadd.f32 %v400_v20, %v399_v23  ;;  %v342_v49 = vadd.f32 %v341_v9, %v340_v62  ;;  %v333_v14 = vadd.f32 %v332_v13, %v331_v10  ;;  %v373_v10 = vrot.slane %v372_v53, 4 }
 0x11f   :  { %v384_v22 = vrot.slane %v383_v27, 2  ;;  %v325_v37 = vrot.slane %v324_v17, 1  ;;  %v351_v18 = vadd.f32 %v350_v26, %v349_v54  ;;  %v755_v26 = vld [vmem:[%s2378_s4] sm:$0x1]  ;;  %v1057_v13 = vlaneseq }
 0x120   :  { %v402_v28 = vrot.slane %v401_v45, 2  ;;  %v343_v42 = vrot.slane %v342_v49, 1  ;;  %v334_v24 = vrot.slane %v333_v14, 1 }
 0x121   :  { %v385_v36 = vadd.f32 %v384_v22, %v383_v27  ;;  %v352_v41 = vrot.slane %v351_v18, 1  ;;  %v326_v61 = vadd.f32 %v325_v37, %v324_v17  ;;  %v1058_v27 = vshrl.u32 %v1057_v13, 7 }
 0x122   :  { %v403_v50 = vadd.f32 %v402_v28, %v401_v45  ;;  %v335_v2 = vadd.f32 %v334_v24, %v333_v14  ;;  %v344_v33 = vadd.f32 %v343_v42, %v342_v49  ;;  %v759_v49 = vld [vmem:[%s2379_s5] sm:$0x1] }
 0x123   :  { %v386_v57 = vrot.slane %v385_v36, 1  ;;  %v353_v21 = vadd.f32 %v352_v41, %v351_v18  ;;  %v1059_v17 = vsub.s32 0, %v1058_v27 }
 0x124   :  { %v404_v60 = vrot.slane %v403_v50, 1  ;;  %534 = vmatprep.mubr.f32.mxu0 %v335_v2  ;;  %v2411_v2 = vld [vmem:[#allocation5_spill] sm:$0xff] }
 0x125   :  { %v387_v12 = vadd.f32 %v386_v57, %v385_v36  ;;  %604 = vmatprep.mubr.f32.mxu1 %v353_v21  ;;  %535 = vmatmul.mubr.f32.vlgmr.msra.gmra.mrb[8].mxu0 %v326_v61  ;;  %v2412_v61 = vld [vmem:[#allocation9_spill] sm:$0xff] }
 0x126   :  { %v405_v9 = vadd.f32 %v404_v60, %v403_v50  ;;  %605 = vmatmul.mubr.f32.vlgmr.msra.gmra.mrb[8].mxu1 %v344_v33  ;;  %1472 = vmatpush3.bf16.msra.mxu0 %v1900_v29  ;;  %v391_v29 = vrot.slane %v390_v5, 4  ;;  %v2413_v60 = vld [vmem:[#allocation13_spill] sm:$0xff] }
 0x127   :  { %1504 = vmatpush3.bf16.msra.mxu1 %v1903_v30  ;;  %674 = vmatprep.mubr.f32.mxu0 %v387_v12  ;;  %v374_v30 = vadd.f32 %v373_v10, %v372_v53  ;;  %v2414_v12 = vld [vmem:[#allocation2_spill] sm:$0xff] }
 0x128   :  { %744 = vmatprep.mubr.f32.mxu1 %v405_v9  ;;  %1474 = vmatprep.subr.bf16.mxu0 %v1937_v39  ;;  %v392_v39 = vadd.f32 %v391_v29, %v390_v5  ;;  %v2415_v10 = vld [vmem:[#allocation6_spill] sm:$0xff] }
 0x129   :  { %1506 = vmatprep.subr.bf16.mxu1 %v1948_v43  ;;  %v375_v43 = vrot.slane %v374_v30, 2 }
 0x12a   :  { %1476 = vmatpush3.bf16.msra.mxu0 %v1950_v44  ;;  %v393_v44 = vrot.slane %v392_v39, 2 }
 0x12b   :  { %1508 = vmatpush3.bf16.msra.mxu1 %v1959_v47  ;;  %1478 = vmatprep.subr.bf16.mxu0 %v1973_v51  ;;  %v376_v47 = vadd.f32 %v375_v43, %v374_v30  ;;  %v2416_v30 = vld [vmem:[#allocation10_spill] sm:$0xff] }
 0x12c   :  { %1510 = vmatprep.subr.bf16.mxu1 %v1984_v55  ;;  %v394_v51 = vadd.f32 %v393_v44, %v392_v39  ;;  %v2417_v43 = vld [vmem:[#allocation14_spill] sm:$0xff] }
 0x12d   :  { %v377_v55 = vrot.slane %v376_v47, 1 }
 0x12e   :  { %1480 = vmatpush3.bf16.msra.mxu0 %v1986_v56  ;;  %v395_v56 = vrot.slane %v394_v51, 1 }
 0x12f   :  { %1512 = vmatpush3.bf16.msra.mxu1 %v1995_v59  ;;  %1482 = vmatprep.subr.bf16.mxu0 %v2009_v63  ;;  %v378_v59 = vadd.f32 %v377_v55, %v376_v47  ;;  %v2418_v55 = vld [vmem:[#allocation3_spill] sm:$0xff] }
 0x130   :  { %1514 = vmatprep.subr.bf16.mxu1 %v2020_v3  ;;  %v396_v63 = vadd.f32 %v395_v56, %v394_v51  ;;  %v763_v3 = vld [vmem:[%s2377_s3 + $0x8] sm:$0xff] }
 0x132   :  { %1484 = vmatpush3.bf16.msra.mxu0 %v2022_v4  ;;  %v765_v4 = vld [vmem:[%s2377_s3 + $0x18] sm:$0xff] }
 0x133   :  { %1516 = vmatpush3.bf16.msra.mxu1 %v2031_v7  ;;  %1486 = vmatprep.subr.bf16.mxu0 %v2045_v11  ;;  %v762_v7 = vld [vmem:[%s2377_s3] sm:$0xff]  ;;  %v1536_v11 = vmov 0.0  }
 0x134   :  { %1518 = vmatprep.subr.bf16.mxu1 %v2056_v15  ;;  %v764_v15 = vld [vmem:[%s2377_s3 + $0x10] sm:$0xff] }
 0x136   :  { %1488 = vmatpush3.bf16.msra.mxu0 %v2058_v16 }
 0x137   :  { %1520 = vmatpush3.bf16.msra.mxu1 %v2067_v19  ;;  %1490 = vmatprep.subr.bf16.mxu0 %v2081_v25 }
 0x138   :  { %1522 = vmatprep.subr.bf16.mxu1 %v2092_v31 }
 0x13a   :  { %1492 = vmatpush3.bf16.msra.mxu0 %v2094_v32 }
 0x13b   :  { %1524 = vmatpush3.bf16.msra.mxu1 %v2103_v35  ;;  %1494 = vmatprep.subr.bf16.mxu0 %v2117_v40 }
 0x13c   :  { %1526 = vmatprep.subr.bf16.mxu1 %v2128_v46 }
 0x13e   :  { %1496 = vmatpush3.bf16.msra.mxu0 %v2130_v48 }
 0x13f   :  { %1528 = vmatpush3.bf16.msra.mxu1 %v2139_v52  ;;  %1498 = vmatprep.subr.bf16.mxu0 %v2153_v58 }
 0x140   :  { %1530 = vmatprep.subr.bf16.mxu1 %v2164_v0 }
 0x142   :  { %1500 = vmatpush3.bf16.msra.mxu0 %v2166_v1 }
 0x143   :  { %1532 = vmatpush3.bf16.msra.mxu1 %v2175_v6  ;;  %770 = vmatprep.subr.mxu0 %v763_v3 }
 0x144   :  { %841 = vmatprep.subr.mxu1 %v765_v4 }
 0x145   :  { %675 = vmatmul.mubr.f32.vlgmr.msra.gmra.mrb[10].mxu0 %v378_v59  ;;  %v2419_v59 = vld [vmem:[#allocation7_spill] sm:$0xff] }
 0x146   :  { %745 = vmatmul.mubr.f32.vlgmr.msra.gmra.mrb[10].mxu1 %v396_v63  ;;  %834 = vmatprep.mubr.f32.mxu0 %v1536_v11  ;;  %v2420_v63 = vld [vmem:[#allocation11_spill] sm:$0xff] }
 0x147   :  { %905 = vmatprep.mubr.f32.mxu1 %v1536_v11  ;;  %771 = vmatpush1.msra.mxu0 %v762_v7 }
 0x148   :  { %842 = vmatpush1.msra.mxu1 %v764_v15  ;;  %915 = vmatprep.subr.mxu0 %v763_v3 }
 0x149   :  { %986 = vmatprep.subr.mxu1 %v765_v4  ;;  %v2421_v4 = vld [vmem:[#allocation15_spill] sm:$0xff] }
 0x1f8   :  { %v1201_v16 = vpop.f32.mrb[8].mxu0 }
 0x1f9   :  { %v1236_v19 = vpop.f32.mrb[8].mxu1  ;;  %v1202_v25 = vpop.f32.mrb[9].mxu0 }
 0x1fa   :  { %v1203_v31 = vadd.f32 %v1202_v25, %v1201_v16  ;;  %v1237_v32 = vpop.f32.mrb[9].mxu1  ;;  %v2422_v16 = vld [vmem:[#allocation4_spill] sm:$0xff] }
 0x1fb   :  { %v1238_v35 = vadd.f32 %v1237_v32, %v1236_v19  ;;  %v2423_v25 = vld [vmem:[#allocation8_spill] sm:$0xff] }
 0x1fc   :  { %v2424_v32 = vld [vmem:[#allocation12_spill] sm:$0xff] }
 0x1fd   :  { %v607_v40 = vadd.f32 %v1238_v35, %v1203_v31 }
 0x1ff   :  { %v750_v1 = vmul.f32 0.00048828125, %v607_v40  ;;  %v2425_v40 = vld [vmem:[#allocation16_spill] sm:$0xff] }
 0x201   :  { %v752_v20 = vmul.f32 %v750_v1, %v750_v1 }
 0x218   :  { %v1271_v46 = vpop.f32.mrb[10].mxu0 }
 0x219   :  { %v1306_v48 = vpop.f32.mrb[10].mxu1  ;;  %v1272_v52 = vpop.f32.mrb[11].mxu0 }
 0x21a   :  { %v1273_v58 = vadd.f32 %v1272_v52, %v1271_v46  ;;  %v1307_v0 = vpop.f32.mrb[11].mxu1 }
 0x21b   :  { %v1308_v6 = vadd.f32 %v1307_v0, %v1306_v48 }
 0x21d   :  { %v747_v14 = vadd.f32 %v1308_v6, %v1273_v58 }
 0x21f   :  { %v751_v23 = vmul.f32 0.00048828125, %v747_v14 }
 0x221   :  { %v753_v45 = vsub.f32 %v751_v23, %v752_v20 }
 0x223   :  { %v754_v54 = vmax.f32 %v753_v45, 0.0 }
 0x225   :  { %v756_v5 = vadd.f32 1e-05, %v754_v54 }
 0x227   :  { %1534 = vrsqrt.f32 %v756_v5 }
 0x231   :  { %v1535_v34 = vpop.eup %1534 }
 0x232   :  { %v758_v38 = vmul.f32 %v1535_v34, %v755_v26 }
 0x234   :  { %1165 = vmatmul.mubr.msk.f32.vlgmr.msra.gmra.mrb[12].mxu0 %vm766_vm1, %v758_v38  ;;  %1166 = vmatmul.mubr.msk.f32.vlgmr.msra.gmra.mrb[12].mxu1 %vm766_vm1, %v758_v38  ;;  %v760_v53 = vmul.f32 %v758_v38, %v750_v1 }
 0x235   :  { %916 = vmatpush1.msra.mxu0 %v762_v7  ;;  %987 = vmatpush1.msra.mxu1 %v764_v15 }
 0x236   :  { %979 = vmatprep.mubr.f32.mxu0 %v1536_v11  ;;  %1050 = vmatprep.mubr.f32.mxu1 %v1536_v11  ;;  %v761_v62 = vsub.f32 %v759_v49, %v760_v53 }
 0x238   :  { %1167 = vmatmul.mubr.msk.f32.vlgmr.msra.gmra.mrb[14].mxu0 %vm766_vm1, %v761_v62  ;;  %1168 = vmatmul.mubr.msk.f32.vlgmr.msra.gmra.mrb[14].mxu1 %vm766_vm1, %v761_v62 }
 0x307   :  { %v836_v22 = vpop.f32.mrb[12].mxu0  ;;  %v907_v37 = vpop.f32.mrb[12].mxu1 }
 0x308   :  { %v1060_v18 = vrot.slane %v836_v22, %v1059_v17  ;;  %v1068_v28 = vrot.slane %v907_v37, %v1059_v17  ;;  %v838_v42 = vpop.f32.mrb[13].mxu0  ;;  %v909_v24 = vpop.f32.mrb[13].mxu1 }
 0x309   :  { %v1064_v36 = vrot.slane %v838_v42, %v1059_v17  ;;  %v1072_v41 = vrot.slane %v909_v24, %v1059_v17 }
 0x30a   :  { %v1073_v50 = vmul.f32 %v1060_v18, %v2182_v8  ;;  %v1077_v57 = vmul.f32 %v1060_v18, %v2411_v2  ;;  %v1081_v21 = vmul.f32 %v1060_v18, %v2412_v61  ;;  %v1085_v33 = vmul.f32 %v1060_v18, %v2413_v60 }
 0x30b   :  { %v1075_v9 = vmul.f32 %v1068_v28, %v2414_v12  ;;  %v1079_v29 = vmul.f32 %v1068_v28, %v2415_v10  ;;  %v1083_v39 = vmul.f32 %v1068_v28, %v2416_v30  ;;  %v1087_v44 = vmul.f32 %v1068_v28, %v2417_v43  ;;  %v981_v47 = vpop.f32.mrb[14].mxu0  ;;  %v1052_v51 = vpop.f32.mrb[14].mxu1 }
 0x30c   :  { %v1074_v56 = vmul.f32 %v1064_v36, %v2418_v55  ;;  %v1078_v8 = vmul.f32 %v1064_v36, %v2419_v59  ;;  %v1082_v3 = vmul.f32 %v1064_v36, %v2420_v63  ;;  %v1086_v7 = vmul.f32 %v1064_v36, %v2421_v4  ;;  %v983_v11 = vpop.f32.mrb[15].mxu0  ;;  %v1054_v15 = vpop.f32.mrb[15].mxu1 }
 0x30d   :  { %v1076_v19 = vmul.f32 %v1072_v41, %v2422_v16  ;;  %v1080_v31 = vmul.f32 %v1072_v41, %v2423_v25  ;;  %v1084_v35 = vmul.f32 %v1072_v41, %v2424_v32  ;;  %v1088_v46 = vmul.f32 %v1072_v41, %v2425_v40 }
 0x30e   :  { %v1092_v48 = vrot.slane %v981_v47, %v1059_v17  ;;  %v1100_v52 = vrot.slane %v1052_v51, %v1059_v17  ;;  %v1096_v58 = vrot.slane %v983_v11, %v1059_v17  ;;  %v1104_v0 = vrot.slane %v1054_v15, %v1059_v17 }
 0x310   :  { %v1105_v1 = vadd.f32 %v1092_v48, %v1073_v50  ;;  %v1109_v6 = vadd.f32 %v1092_v48, %v1077_v57  ;;  %v1113_v14 = vadd.f32 %v1092_v48, %v1081_v21  ;;  %v1117_v20 = vadd.f32 %v1092_v48, %v1085_v33 }
 0x311   :  { %v1107_v23 = vadd.f32 %v1100_v52, %v1075_v9  ;;  %v1111_v45 = vadd.f32 %v1100_v52, %v1079_v29  ;;  %v1115_v54 = vadd.f32 %v1100_v52, %v1083_v39  ;;  %v1119_v5 = vadd.f32 %v1100_v52, %v1087_v44 }
 0x312   :  { %v1121_v26 = vmax.f32 %v1105_v1, 0.0  ;;  %v1125_v34 = vmax.f32 %v1109_v6, 0.0  ;;  %v1129_v38 = vmax.f32 %v1113_v14, 0.0  ;;  %v1133_v49 = vmax.f32 %v1117_v20, 0.0 }
 0x313   :  { %v1123_v53 = vmax.f32 %v1107_v23, 0.0  ;;  %v1127_v62 = vmax.f32 %v1111_v45, 0.0  ;;  %v1131_v13 = vmax.f32 %v1115_v54, 0.0  ;;  %v1135_v27 = vmax.f32 %v1119_v5, 0.0 }
 0x314   :  { %1137 = vst [vmem:[%s2380_s6] sm:$0xff] %v1121_v26  ;;  %1141 = vst [vmem:[%s2380_s6 + $0x20] sm:$0xff] %v1125_v34  ;;  %v1106_v17 = vadd.f32 %v1096_v58, %v1074_v56  ;;  %v1110_v22 = vadd.f32 %v1096_v58, %v1078_v8  ;;  %v1114_v37 = vadd.f32 %v1096_v58, %v1082_v3 }
 0x315   :  { %1145 = vst [vmem:[%s2380_s6 + $0x40] sm:$0xff] %v1129_v38  ;;  %1149 = vst [vmem:[%s2380_s6 + $0x60] sm:$0xff] %v1133_v49  ;;  %v1118_v18 = vadd.f32 %v1096_v58, %v1086_v7  ;;  %v1108_v28 = vadd.f32 %v1104_v0, %v1076_v19  ;;  %v1112_v42 = vadd.f32 %v1104_v0, %v1080_v31 }
 0x316   :  { %1139 = vst [vmem:[%s2380_s6 + $0x10] sm:$0xff] %v1123_v53  ;;  %1143 = vst [vmem:[%s2380_s6 + $0x30] sm:$0xff] %v1127_v62  ;;  %v1116_v24 = vadd.f32 %v1104_v0, %v1084_v35  ;;  %v1120_v36 = vadd.f32 %v1104_v0, %v1088_v46  ;;  %v1122_v41 = vmax.f32 %v1106_v17, 0.0  ;;  %v1126_v50 = vmax.f32 %v1110_v22, 0.0 }
 0x317   :  { %1147 = vst [vmem:[%s2380_s6 + $0x50] sm:$0xff] %v1131_v13  ;;  %1151 = vst [vmem:[%s2380_s6 + $0x70] sm:$0xff] %v1135_v27  ;;  %v1130_v2 = vmax.f32 %v1114_v37, 0.0  ;;  %v1134_v57 = vmax.f32 %v1118_v18, 0.0  ;;  %v1124_v61 = vmax.f32 %v1108_v28, 0.0  ;;  %v1128_v21 = vmax.f32 %v1112_v42, 0.0 }
 0x318   :  { %v1132_v60 = vmax.f32 %v1116_v24, 0.0  ;;  %v1136_v33 = vmax.f32 %v1120_v36, 0.0  ;;  %1138 = vst [vmem:[%s2380_s6 + $0x8] sm:$0xff] %v1122_v41  ;;  %1142 = vst [vmem:[%s2380_s6 + $0x28] sm:$0xff] %v1126_v50 }
 0x319   :  { %1146 = vst [vmem:[%s2380_s6 + $0x48] sm:$0xff] %v1130_v2  ;;  %1150 = vst [vmem:[%s2380_s6 + $0x68] sm:$0xff] %v1134_v57 }
 0x31a   :  { %1140 = vst [vmem:[%s2380_s6 + $0x18] sm:$0xff] %v1124_v61  ;;  %1144 = vst [vmem:[%s2380_s6 + $0x38] sm:$0xff] %v1128_v21 }
 0x31b   :  { %1148 = vst [vmem:[%s2380_s6 + $0x58] sm:$0xff] %v1132_v60  ;;  %1152 = vst [vmem:[%s2380_s6 + $0x78] sm:$0xff] %v1136_v33 }

</bundles_post_ra>
